<compile_context>
chip_gen: v7x
topology: tpu7x:2x2x1
jax: 0.10.0
libtpu: 0.0.40
codegen_flags: <defaults>
</compile_context>

<pallas_src>
import jax
import jax.numpy as jnp
from jax.experimental import pallas as pl
from jax.experimental.pallas import tpu as pltpu


def _round_up(x, m):
    return (x + m - 1) // m * m


_MAX_TILE_ROWS = 2048     # per grid step; ~1.3 MiB double-buffered VMEM even at max
_SINGLE_TILE_MAX = 1024   # batches at or below this run as one grid step


def _choose_tiling(batch):
    """Pick (tile_b, num_tiles) for the 1-D batch grid.

    - Small batches: one big tile (splitting only adds per-step overhead).
    - Large batches: an even number of tiles (v7x has 2 TensorCores sharded via
      dimension_semantics=("parallel",)), each <= _MAX_TILE_ROWS, sized so the
      last (partial) tile wastes at most 15 rows.
    - Tile rows are a multiple of 16 so the bf16 output block respects the
      (16, 128) bf16 tiling (also satisfies f32's (8, 128) for obs).
    """
    if batch <= _SINGLE_TILE_MAX:
        return _round_up(batch, 16), 1
    num_tiles = 2 * pl.cdiv(batch, 2 * _MAX_TILE_ROWS)
    tile_b = _round_up(pl.cdiv(batch, num_tiles), 16)
    return tile_b, num_tiles


def _mlp_actor_kernel(act_limit_ref,
                      obs_ref,
                      w1_ref, b1_ref,
                      w2_ref, b2_ref,
                      w3_ref, b3_ref,
                      out_ref):
    act_limit = act_limit_ref[0]

    # Layer 1: Linear + ReLU. bf16 operands on the MXU, f32 accumulate;
    # elementwise path (bias, ReLU, tanh) stays f32 (no bf16 VPU/EUP on v5e).
    h = jnp.dot(obs_ref[...].astype(jnp.bfloat16), w1_ref[...],
                preferred_element_type=jnp.float32) + b1_ref[...]
    h = jnp.maximum(h, 0.0)

    # Layer 2: Linear + ReLU.
    h = jnp.dot(h.astype(jnp.bfloat16), w2_ref[...],
                preferred_element_type=jnp.float32) + b2_ref[...]
    h = jnp.maximum(h, 0.0)

    # Output layer: Linear + Tanh, scaled by act_limit. Output columns beyond
    # act_dim hit zero-padded w3/b3 -> tanh(0)=0, sliced off in the wrapper.
    # Store in bf16: halves the output writeback DMA (the dominant per-step DMA).
    h = jnp.dot(h.astype(jnp.bfloat16), w3_ref[...],
                preferred_element_type=jnp.float32) + b3_ref[...]
    out_ref[...] = (act_limit * jnp.tanh(h)).astype(out_ref.dtype)


def mlp_actor_forward(obs, params, act_limit, act_dim):
    """obs: [B, obs_dim] f32 (or bf16). params: w* bf16 [in, out] pre-transposed,
    b* f32 [1, out]; the final layer is pre-padded to 128 output lanes at init."""
    w1, b1 = params["w1"], params["b1"]
    w2, b2 = params["w2"], params["b2"]
    w3, b3 = params["w3"], params["b3"]

    B, obs_dim = obs.shape
    h1 = w1.shape[1]
    h2 = w2.shape[1]
    out_pad = w3.shape[1]          # lane-dense (multiple of 128), padded at init

    tile_b, num_tiles = _choose_tiling(B)

    act_limit_arr = jnp.asarray([act_limit], dtype=jnp.float32)

    flops = 2 * num_tiles * tile_b * (obs_dim * h1 + h1 * h2 + h2 * out_pad)
    bytes_accessed = (
        obs.size * obs.dtype.itemsize
        + w1.size * w1.dtype.itemsize + b1.size * b1.dtype.itemsize
        + w2.size * w2.dtype.itemsize + b2.size * b2.dtype.itemsize
        + w3.size * w3.dtype.itemsize + b3.size * b3.dtype.itemsize
        + B * out_pad * 2
        + act_limit_arr.size * 4)

    # Weights/biases: constant index_map -> DMA'd once, VMEM-resident across tiles.
    def resident(arr):
        return pl.BlockSpec(arr.shape, lambda i: (0, 0))

    out = pl.pallas_call(
        _mlp_actor_kernel,
        out_shape=jax.ShapeDtypeStruct((B, out_pad), jnp.bfloat16),
        grid=(num_tiles,),
        in_specs=[
            pl.BlockSpec(memory_space=pltpu.MemorySpace.SMEM),    # act_limit scalar
            pl.BlockSpec((tile_b, obs_dim), lambda i: (i, 0)),    # obs: batch-tiled
            resident(w1), resident(b1),
            resident(w2), resident(b2),
            resident(w3), resident(b3),
        ],
        out_specs=pl.BlockSpec((tile_b, out_pad), lambda i: (i, 0)),
        compiler_params=pltpu.CompilerParams(
            dimension_semantics=("parallel",)),
        cost_estimate=pl.CostEstimate(
            flops=flops,
            transcendentals=num_tiles * tile_b * out_pad,
            bytes_accessed=bytes_accessed),
    )(act_limit_arr, obs, w1, b1, w2, b2, w3, b3)

    # Slice off the lane padding; upcast the bf16 store back to f32 for callers.
    return out[:, :act_dim].astype(jnp.float32)


def init_params(key, obs_dim, hidden_sizes, act_dim):
    """Mimics nn.Linear default init U(-1/sqrt(fan_in), 1/sqrt(fan_in)).

    Weights stored transposed [in, out] in bf16 (MXU-native, half the DMA bytes);
    biases stored [1, out] in f32. The final layer is zero-padded to 128 output
    lanes here (once), so the forward path has no per-call padding ops.
    """
    sizes = [obs_dim] + list(hidden_sizes) + [act_dim]
    params = {}
    n_layers = len(sizes) - 1
    for i, (fan_in, fan_out) in enumerate(zip(sizes[:-1], sizes[1:]), start=1):
        key, kw, kb = jax.random.split(key, 3)
        bound = float(fan_in) ** -0.5
        w = jax.random.uniform(kw, (fan_in, fan_out), jnp.float32, -bound, bound)
        b = jax.random.uniform(kb, (1, fan_out), jnp.float32, -bound, bound)
        if i == n_layers:  # lane-dense final layer: pad output features to 128
            out_pad = _round_up(fan_out, 128)
            w = jnp.pad(w, ((0, 0), (0, out_pad - fan_out)))
            b = jnp.pad(b, ((0, 0), (0, out_pad - fan_out)))
        params[f"w{i}"] = w.astype(jnp.bfloat16)
        params[f"b{i}"] = b
    return params


def reference_forward(obs, params, act_limit, act_dim):
    """Pure-JAX reference with the same mixed precision (bf16 operands, f32 accumulate)."""
    def lin(x, w, b):
        return jnp.dot(x.astype(jnp.bfloat16), w,
                       preferred_element_type=jnp.float32) + b
    h = jnp.maximum(lin(obs, params["w1"], params["b1"]), 0.0)
    h = jnp.maximum(lin(h, params["w2"], params["b2"]), 0.0)
    return (act_limit * jnp.tanh(lin(h, params["w3"], params["b3"])))[:, :act_dim]


if __name__ == "__main__":
    # Small shapes consistent with the module's forward.
    obs_dim = 16
    hidden_sizes = (32, 32)
    act_dim = 8
    act_limit = 2.0

    key = jax.random.PRNGKey(0)
    key, kp = jax.random.split(key)
    params = init_params(kp, obs_dim, hidden_sizes, act_dim)

    # Tiny batch: single grid step, block bigger than the array (OOB rows masked).
    key, k1 = jax.random.split(key)
    obs_small = jax.random.normal(k1, (2, obs_dim), jnp.float32)
    out_small = jax.block_until_ready(
        mlp_actor_forward(obs_small, params, act_limit, act_dim))
    ref_small = reference_forward(obs_small, params, act_limit, act_dim)
    assert out_small.shape == (2, act_dim)
    assert jnp.allclose(out_small, ref_small, atol=2e-2, rtol=2e-2)

    # Mid batch: single grid step with a partial block (600 rows vs tile of 608).
    key, k2 = jax.random.split(key)
    obs_mid = jax.random.normal(k2, (600, obs_dim), jnp.float32)
    out_mid = jax.block_until_ready(
        mlp_actor_forward(obs_mid, params, act_limit, act_dim))
    ref_mid = reference_forward(obs_mid, params, act_limit, act_dim)
    assert out_mid.shape == (600, act_dim)
    assert jnp.allclose(out_mid, ref_mid, atol=2e-2, rtol=2e-2)

    # Large batch: even tile count (v7x megacore), VMEM-resident weights across
    # steps, partial last block handled by Pallas masking (no wrapper-side pad).
    key, k3 = jax.random.split(key)
    obs_big = jax.random.normal(k3, (3000, obs_dim), jnp.float32)
    out_big = jax.block_until_ready(
        mlp_actor_forward(obs_big, params, act_limit, act_dim))
    ref_big = reference_forward(obs_big, params, act_limit, act_dim)
    assert out_big.shape == (3000, act_dim)
    assert jnp.allclose(out_big, ref_big, atol=2e-2, rtol=2e-2)

    print("KERNEL_OK")
</pallas_src>

<mosaic_0001>
module attributes {stable_mosaic.version = 11 : i64} {
  func.func @_mlp_actor_kernel(%arg0: i32, %arg1: memref<1xf32, #tpu.memory_space<smem>>, %arg2: memref<16x16xf32, #tpu.memory_space<vmem>>, %arg3: memref<16x32xbf16, #tpu.memory_space<vmem>>, %arg4: memref<1x32xf32, #tpu.memory_space<vmem>>, %arg5: memref<32x32xbf16, #tpu.memory_space<vmem>>, %arg6: memref<1x32xf32, #tpu.memory_space<vmem>>, %arg7: memref<32x128xbf16, #tpu.memory_space<vmem>>, %arg8: memref<1x128xf32, #tpu.memory_space<vmem>>, %arg9: memref<16x128xbf16, #tpu.memory_space<vmem>>) attributes {dimension_semantics = [#tpu.dimension_semantics<parallel>], iteration_bounds = array<i64: 1>, scalar_prefetch = 0 : i64, scratch_operands = 0 : i64, tpu.core_type = #tpu.core_type<tc>, window_params = [{transform_indices = @transform_0, window_bounds = array<i64: 1>}, {transform_indices = @transform_1, window_bounds = array<i64: 16, 16>}, {pipeline_mode = #tpu.pipeline_mode<synchronous>, transform_indices = @transform_2, window_bounds = array<i64: 16, 32>}, {pipeline_mode = #tpu.pipeline_mode<synchronous>, transform_indices = @transform_3, window_bounds = array<i64: 1, 32>}, {pipeline_mode = #tpu.pipeline_mode<synchronous>, transform_indices = @transform_4, window_bounds = array<i64: 32, 32>}, {pipeline_mode = #tpu.pipeline_mode<synchronous>, transform_indices = @transform_5, window_bounds = array<i64: 1, 32>}, {pipeline_mode = #tpu.pipeline_mode<synchronous>, transform_indices = @transform_6, window_bounds = array<i64: 32, 128>}, {pipeline_mode = #tpu.pipeline_mode<synchronous>, transform_indices = @transform_7, window_bounds = array<i64: 1, 128>}, {transform_indices = @transform_8, window_bounds = array<i64: 16, 128>}]} {
    %c0 = arith.constant 0 : index
    %0 = memref.load %arg1[%c0] : memref<1xf32, #tpu.memory_space<smem>>
    %c0_0 = arith.constant 0 : index
    %c0_1 = arith.constant 0 : index
    %1 = vector.load %arg2[%c0_0, %c0_1] : memref<16x16xf32, #tpu.memory_space<vmem>>, vector<16x16xf32>
    %2 = arith.truncf %1 : vector<16x16xf32> to vector<16x16xbf16>
    %c0_2 = arith.constant 0 : index
    %c0_3 = arith.constant 0 : index
    %3 = vector.load %arg3[%c0_2, %c0_3] : memref<16x32xbf16, #tpu.memory_space<vmem>>, vector<16x32xbf16>
    %cst = arith.constant dense<0.000000e+00> : vector<16x32xf32>
    %4 = tpu.matmul %2, %3, %cst {dimension_numbers = #tpu.dot_dimension_numbers<[1], [0], [0], [1], [0, 0, 1, 1], [], []>} : vector<16x16xbf16>, vector<16x32xbf16>, vector<16x32xf32> -> vector<16x32xf32>
    %c0_4 = arith.constant 0 : index
    %c0_5 = arith.constant 0 : index
    %5 = vector.load %arg4[%c0_4, %c0_5] : memref<1x32xf32, #tpu.memory_space<vmem>>, vector<1x32xf32>
    %6 = vector.broadcast %5 : vector<1x32xf32> to vector<16x32xf32>
    %7 = arith.addf %4, %6 : vector<16x32xf32>
    %cst_6 = arith.constant 0.000000e+00 : f32
    %8 = vector.broadcast %cst_6 : f32 to vector<16x32xf32>
    %9 = arith.maximumf %7, %8 : vector<16x32xf32>
    %10 = arith.truncf %9 : vector<16x32xf32> to vector<16x32xbf16>
    %c0_7 = arith.constant 0 : index
    %c0_8 = arith.constant 0 : index
    %11 = vector.load %arg5[%c0_7, %c0_8] : memref<32x32xbf16, #tpu.memory_space<vmem>>, vector<32x32xbf16>
    %cst_9 = arith.constant dense<0.000000e+00> : vector<16x32xf32>
    %12 = tpu.matmul %10, %11, %cst_9 {dimension_numbers = #tpu.dot_dimension_numbers<[1], [0], [0], [1], [0, 0, 1, 1], [], []>} : vector<16x32xbf16>, vector<32x32xbf16>, vector<16x32xf32> -> vector<16x32xf32>
    %c0_10 = arith.constant 0 : index
    %c0_11 = arith.constant 0 : index
    %13 = vector.load %arg6[%c0_10, %c0_11] : memref<1x32xf32, #tpu.memory_space<vmem>>, vector<1x32xf32>
    %14 = vector.broadcast %13 : vector<1x32xf32> to vector<16x32xf32>
    %15 = arith.addf %12, %14 : vector<16x32xf32>
    %cst_12 = arith.constant 0.000000e+00 : f32
    %16 = vector.broadcast %cst_12 : f32 to vector<16x32xf32>
    %17 = arith.maximumf %15, %16 : vector<16x32xf32>
    %18 = arith.truncf %17 : vector<16x32xf32> to vector<16x32xbf16>
    %c0_13 = arith.constant 0 : index
    %c0_14 = arith.constant 0 : index
    %19 = vector.load %arg7[%c0_13, %c0_14] : memref<32x128xbf16, #tpu.memory_space<vmem>>, vector<32x128xbf16>
    %cst_15 = arith.constant dense<0.000000e+00> : vector<16x128xf32>
    %20 = tpu.matmul %18, %19, %cst_15 {dimension_numbers = #tpu.dot_dimension_numbers<[1], [0], [0], [1], [0, 0, 1, 1], [], []>} : vector<16x32xbf16>, vector<32x128xbf16>, vector<16x128xf32> -> vector<16x128xf32>
    %c0_16 = arith.constant 0 : index
    %c0_17 = arith.constant 0 : index
    %21 = vector.load %arg8[%c0_16, %c0_17] : memref<1x128xf32, #tpu.memory_space<vmem>>, vector<1x128xf32>
    %22 = vector.broadcast %21 : vector<1x128xf32> to vector<16x128xf32>
    %23 = arith.addf %20, %22 : vector<16x128xf32>
    %24 = math.tanh %23 : vector<16x128xf32>
    %25 = vector.broadcast %0 : f32 to vector<16x128xf32>
    %26 = arith.mulf %25, %24 : vector<16x128xf32>
    %27 = arith.truncf %26 : vector<16x128xf32> to vector<16x128xbf16>
    %c0_18 = arith.constant 0 : index
    %c0_19 = arith.constant 0 : index
    %28 = vector.load %arg9[%c0_18, %c0_19] : memref<16x128xbf16, #tpu.memory_space<vmem>>, vector<16x128xbf16>
    tpu.vector_store %arg9[%c0_18, %c0_19], %27 {strides = array<i32>} : memref<16x128xbf16, #tpu.memory_space<vmem>>, vector<16x128xbf16>,
    return
  }
  func.func @transform_0(%arg0: i32) -> i32 {
    %c0_i32 = arith.constant 0 : i32
    %c0_i32_0 = arith.constant 0 : i32
    return %c0_i32 : i32
  }
  func.func @transform_1(%arg0: i32) -> (i32, i32) {
    %c0_i32 = arith.constant 0 : i32
    %c0_i32_0 = arith.constant 0 : i32
    return %arg0, %c0_i32 : i32, i32
  }
  func.func @transform_2(%arg0: i32) -> (i32, i32) {
    %c0_i32 = arith.constant 0 : i32
    %c0_i32_0 = arith.constant 0 : i32
    %c0_i32_1 = arith.constant 0 : i32
    return %c0_i32, %c0_i32_0 : i32, i32
  }
  func.func @transform_3(%arg0: i32) -> (i32, i32) {
    %c0_i32 = arith.constant 0 : i32
    %c0_i32_0 = arith.constant 0 : i32
    %c0_i32_1 = arith.constant 0 : i32
    return %c0_i32, %c0_i32_0 : i32, i32
  }
  func.func @transform_4(%arg0: i32) -> (i32, i32) {
    %c0_i32 = arith.constant 0 : i32
    %c0_i32_0 = arith.constant 0 : i32
    %c0_i32_1 = arith.constant 0 : i32
    return %c0_i32, %c0_i32_0 : i32, i32
  }
  func.func @transform_5(%arg0: i32) -> (i32, i32) {
    %c0_i32 = arith.constant 0 : i32
    %c0_i32_0 = arith.constant 0 : i32
    %c0_i32_1 = arith.constant 0 : i32
    return %c0_i32, %c0_i32_0 : i32, i32
  }
  func.func @transform_6(%arg0: i32) -> (i32, i32) {
    %c0_i32 = arith.constant 0 : i32
    %c0_i32_0 = arith.constant 0 : i32
    %c0_i32_1 = arith.constant 0 : i32
    return %c0_i32, %c0_i32_0 : i32, i32
  }
  func.func @transform_7(%arg0: i32) -> (i32, i32) {
    %c0_i32 = arith.constant 0 : i32
    %c0_i32_0 = arith.constant 0 : i32
    %c0_i32_1 = arith.constant 0 : i32
    return %c0_i32, %c0_i32_0 : i32, i32
  }
  func.func @transform_8(%arg0: i32) -> (i32, i32) {
    %c0_i32 = arith.constant 0 : i32
    %c0_i32_0 = arith.constant 0 : i32
    return %arg0, %c0_i32 : i32, i32
  }
}

</mosaic_0001>

<bundles_post_ra>
// kernel: tpu_custom_call.1
= control target key start
LH: loop header
LB: loop body
LE: loop exit
PB: predicated region body
PF: predicated region fallthrough
CT: control target
= control target key end

     0   :  { %14 = vsyncpa [#allocation4], 0  ;;  %s609_s0 = inlined_call_operand.<no memory space> [shape: f32[1], index: 0, kind: input, shape index: {}]   ;;  %s610_s1 = inlined_call_operand.vmem [shape: f32[2,16], index: 1, kind: input, shape index: {}]   ;;  %s611_s2 = inlined_call_operand.hbm [shape: bf16[16,32], index: 2, kind: input, shape index: {}]   ;;  %s612_s3 = inlined_call_operand.vmem [shape: f32[1,32], index: 3, kind: input, shape index: {}]   ;;  %s613_s4 = inlined_call_operand.hbm [shape: bf16[32,32], index: 4, kind: input, shape index: {}]   ;;  %s614_s5 = inlined_call_operand.vmem [shape: f32[1,32], index: 5, kind: input, shape index: {}]   ;;  %s615_s6 = inlined_call_operand.vmem [shape: bf16[32,128], index: 6, kind: input, shape index: {}]   ;;  %s616_s7 = inlined_call_operand.vmem [shape: f32[1,128], index: 7, kind: input, shape index: {}]   ;;  %s617_s8 = inlined_call_operand.hbm [shape: bf16[2,128], index: 8, kind: output, shape index: {}]  }
   0x1   :  { %15 = vsyncpa [#allocation7], 0 }
   0x2   :  { %16 = vsyncpa [#allocation5], 0  ;;  %s492_s27 = smov [#allocation3]   ;;  %s420_s9 = scalar_lea.hbm %s611_s2, 128 }
   0x3   :  { %s26_s28 = sshll.u32 %s492_s27, 4  ;;  %p421_p0 = scmp.ne.s32.totalorder %s611_s2, %s420_s9  ;;  %s27_s28 = int_to_ptr.vmem [resolvable:$true] %s26_s28 }
   0x4   :  { %p424_p1 = scmp.lt.u32.totalorder %s420_s9, %s611_s2 }
   0x6   :  { %p426_p2 = pnand %p424_p1, %p421_p0 }
   0x8   :  { %429 = shalt.err (!%p426_p2)
}
   0x9   :  { %s430_s14 = scalar_lea.vmem %s27_s28, 128  ;;  %p435_p4 = scmp.lt.s32.totalorder %s27_s28, %s27_s28 }
   0xa   :  { %p431_p3 = scmp.ne.s32.totalorder %s27_s28, %s430_s14  ;;  %p436_p5 = scmp.lt.s32.totalorder %s430_s14, %s430_s14 }
   0xc   :  { %p437_p6 = por %p436_p5, %p435_p4 }
   0xe   :  { %p438_p7 = pnand %p437_p6, %p431_p3 }
  0x10   :  { %441 = shalt.err (!%p438_p7)
}
  0x11   :  { %s493_s15 = smov 64   ;;  %s494_s16 = smov 4  }
  0x12   :  { %32 = dma.hbm_to_vmem [thread:$0]  %s611_s2, 128, %s27_s28, [#allocation4], %s493_s15, %s493_s15, %s494_s16  }
  0x13   :  { %s495_s19 = smov [#allocation6]   ;;  %s442_s23 = scalar_lea.hbm %s613_s4, 256 }
  0x14   :  { %s40_s20 = sshll.u32 %s495_s19, 4  ;;  %p443_p8 = scmp.ne.s32.totalorder %s613_s4, %s442_s23  ;;  %s41_s20 = int_to_ptr.vmem [resolvable:$true] %s40_s20 }
  0x15   :  { %p446_p9 = scmp.lt.u32.totalorder %s442_s23, %s613_s4 }
  0x17   :  { %p448_p10 = pnand %p446_p9, %p443_p8 }
  0x19   :  { %451 = shalt.err (!%p448_p10)
}
  0x1a   :  { %s452_s29 = scalar_lea.vmem %s41_s20, 256  ;;  %p457_p12 = scmp.lt.s32.totalorder %s41_s20, %s41_s20 }
  0x1b   :  { %p453_p11 = scmp.ne.s32.totalorder %s41_s20, %s452_s29  ;;  %p458_p13 = scmp.lt.s32.totalorder %s452_s29, %s452_s29 }
  0x1d   :  { %p459_p0 = por %p458_p13, %p457_p12 }
  0x1f   :  { %p460_p1 = pnand %p459_p0, %p453_p11 }
  0x21   :  { %463 = shalt.err (!%p460_p1)
}
  0x22   :  { %46 = dma.hbm_to_vmem [thread:$0]  %s613_s4, 256, %s41_s20, [#allocation7], %s493_s15, %s493_s15, %s494_s16  }
  0x23   :  { %486 = dma.done.wait [#allocation4], 128  }
  0x24   :  { %487 = vsyncadd [#allocation4], 4294967168 }
  0x25   :  { %488 = dma.done.wait [#allocation7], 256  }
  0x26   :  { %489 = vsyncadd [#allocation7], 4294967040  ;;  %v496_v0 = vmov 0.0   ;;  %vm497_vm0 = vmmov 0   ;;  %v411_v1 = vld [vmem:[#allocation3] sm:$0xff]   ;;  %v62_v3 = vld [vmem:[%s610_s1 + $0x8] sm:$0xff]  ;;  %v276_v38 = vlaneseq  ;;  %v267_v42 = vstv %s609_s0 }
  0x27   :  { %379 = vmatprep.subr.bf16.mxu0 %v496_v0  ;;  %381 = vmatprep.mubr.msk.bf16.mxu0 %vm497_vm0, %v496_v0  ;;  %v61_v2 = vld [vmem:[%s610_s1] sm:$0xff]  ;;  %vm79_vm1 = vcmask 130048   ;;  %v412_v5 = vld [vmem:[#allocation6] sm:$0xff]   ;;  %v413_v6 = vld [vmem:[#allocation6 + $0x8] sm:$0xff]   ;;  %vm150_vm2 = vcmask 261120  }
  0x28   :  { %385 = vmatprep.subr.bf16.mxu1 %v496_v0  ;;  %389 = vmatprep.mubr.msk.bf16.mxu1 %vm497_vm0, %v496_v0  ;;  %v63_v4 = vpack.c.bf16 %v62_v3, %v61_v2  ;;  %v355_v7 = vld [vmem:[%s612_s3] ss:$0 sm:$0xff]  ;;  %v415_v18 = vld [vmem:[%s615_s6 + $0x8] sm:$0xff]   ;;  %v498_v36 = vmov 1966171168   ;;  %v277_v40 = vshrl.u32 %v276_v38, 7 }
  0x29   :  { %380 = vmatpush3.bf16.msra.mxu0 %v411_v1  ;;  %386 = vmatpush3.bf16.msra.mxu1 %v412_v5  ;;  %v414_v17 = vld [vmem:[%s615_s6] sm:$0xff]   ;;  %v274_v37 = vunpack.c.l.s4 %v498_v36 }
  0x2a   :  { %393 = vmatprep.subr.bf16.mxu0 %v496_v0  ;;  %387 = vmatprep.subr.bf16.mxu1 %v496_v0  ;;  %v358_v19 = vld [vmem:[%s614_s5] ss:$0 sm:$0xff] }
  0x2b   :  { %v362_v29 = vld [vmem:[%s616_s7] ss:$0 sm:$0xff]  ;;  %v275_v39 = vunpack.c.0.s8 %v274_v37 }
  0x2c   :  { %382 = vmatmul.mubr.msk.bf16.vlgmr.msra.gmra.mrb[0].mxu0 %vm79_vm1, %v63_v4 }
  0x2d   :  { %397 = vmatprep.mubr.msk.bf16.mxu0 %vm497_vm0, %v496_v0  ;;  %388 = vmatpush3.bf16.msra.mxu1 %v413_v6  ;;  %v278_v46 = vsub.s32 %v275_v39, %v277_v40 }
  0x2e   :  { %394 = vmatpush3.bf16.msra.mxu0 %v414_v17 }
  0x2f   :  { %395 = vmatprep.subr.bf16.mxu0 %v496_v0 }
  0x32   :  { %396 = vmatpush3.bf16.msra.mxu0 %v415_v18 }
  0xff   :  { %v117_v8 = vpop.f32.mrb[0].mxu0 }
 0x100   :  { %v118_v9 = vadd.f32 %v355_v7, %v117_v8  ;;  %v383_v10 = vpop.f32.mrb[1].mxu0 }
 0x101   :  { %v120_v11 = vpop.f32.mrb[2].mxu0 }
 0x102   :  { %v121_v12 = vadd.f32 %v355_v7, %v120_v11  ;;  %v384_v13 = vpop.f32.mrb[3].mxu0  ;;  %v124_v14 = vmax.f32 %v118_v9, 0.0 }
 0x104   :  { %v125_v15 = vmax.f32 %v121_v12, 0.0 }
 0x106   :  { %v126_v16 = vpack.c.bf16 %v125_v15, %v124_v14 }
 0x108   :  { %390 = vmatmul.mubr.msk.bf16.vlgmr.msra.gmra.mrb[0].mxu1 %vm150_vm2, %v126_v16 }
 0x1db   :  { %v188_v20 = vpop.f32.mrb[0].mxu1 }
 0x1dc   :  { %v189_v21 = vadd.f32 %v358_v19, %v188_v20  ;;  %v391_v22 = vpop.f32.mrb[1].mxu1 }
 0x1dd   :  { %v191_v23 = vpop.f32.mrb[2].mxu1 }
 0x1de   :  { %v192_v24 = vadd.f32 %v358_v19, %v191_v23  ;;  %v392_v25 = vpop.f32.mrb[3].mxu1  ;;  %v195_v26 = vmax.f32 %v189_v21, 0.0 }
 0x1e0   :  { %v196_v27 = vmax.f32 %v192_v24, 0.0 }
 0x1e2   :  { %v197_v28 = vpack.c.bf16 %v196_v27, %v195_v26 }
 0x1e4   :  { %398 = vmatmul.mubr.msk.bf16.vlgmr.msra.gmra.mrb[4].mxu0 %vm150_vm2, %v197_v28 }
 0x2b7   :  { %v258_v30 = vpop.f32.mrb[4].mxu0 }
 0x2b8   :  { %v259_v31 = vadd.f32 %v362_v29, %v258_v30  ;;  %v399_v32 = vpop.f32.mrb[5].mxu0 }
 0x2b9   :  { %v261_v33 = vpop.f32.mrb[6].mxu0 }
 0x2ba   :  { %416 = vtanh.f32 %v259_v31  ;;  %v262_v34 = vadd.f32 %v362_v29, %v261_v33  ;;  %v400_v35 = vpop.f32.mrb[7].mxu0 }
 0x2bc   :  { %418 = vtanh.f32 %v262_v34 }
 0x2c4   :  { %v417_v41 = vpop.eup %416 }
 0x2c5   :  { %v268_v44 = vmul.f32 %v417_v41, %v267_v42 }
 0x2c6   :  { %v419_v43 = vpop.eup %418 }
 0x2c7   :  { %v269_v45 = vmul.f32 %v419_v43, %v267_v42 }
 0x2c9   :  { %v270_v47 = vpack.c.bf16 %v269_v45, %v268_v44  ;;  %v366_v48 = vpack.c.bf16 %v269_v45, %v269_v45 }
 0x2cb   :  { %v279_v49 = vrot.slane %v270_v47, %v278_v46  ;;  %v286_v50 = vrot.slane %v366_v48, %v278_v46 }
 0x2cd   :  { %v287_v51 = vcombine.high %v279_v49, %v279_v49  ;;  %v288_v52 = vcombine.high %v286_v50, %v286_v50  ;;  %v295_v53 = vrot.slane %v279_v49, %v278_v46  ;;  %v302_v54 = vrot.slane %v286_v50, %v278_v46  ;;  %367 = vst.sshfl [vmem:[#allocation8] sm:$0x1 pattern:$0x73625140] %v279_v49 }
 0x2ce   :  { %369 = vst.sshfl [vmem:[#allocation8 + $0x4] sm:$0x1 pattern:$0x73625140] %v286_v50 }
 0x2cf   :  { %v309_v55 = vrot.slane %v287_v51, %v278_v46  ;;  %v316_v56 = vrot.slane %v288_v52, %v278_v46  ;;  %v317_v57 = vcombine.high %v295_v53, %v295_v53  ;;  %v318_v58 = vcombine.high %v302_v54, %v302_v54  ;;  %368 = vst.sshfl [vmem:[#allocation8 + $0x1] sm:$0x1 pattern:$0x73625140] %v287_v51 }
 0x2d0   :  { %370 = vst.sshfl [vmem:[#allocation8 + $0x5] sm:$0x1 pattern:$0x73625140] %v288_v52 }
 0x2d1   :  { %v319_v59 = vcombine.high %v309_v55, %v309_v55  ;;  %v320_v60 = vcombine.high %v316_v56, %v316_v56  ;;  %331 = vst [vmem:[#allocation8 + $0x2] sm:$0x1] %v317_v57  ;;  %335 = vst [vmem:[#allocation8 + $0x6] sm:$0x1] %v318_v58 }
 0x2d3   :  { %332 = vst [vmem:[#allocation8 + $0x3] sm:$0x1] %v319_v59  ;;  %336 = vst [vmem:[#allocation8 + $0x7] sm:$0x1] %v320_v60 }
 0x2d4   :  { %341 = vsyncadd [#allocation5], 112  ;;  %s499_s0 = smov [#allocation8]  }
 0x2d5   :  { %s342_s7 = sshll.u32 %s499_s0, 4  ;;  %s343_s7 = int_to_ptr.vmem [resolvable:$true] %s342_s7 }
 0x2d6   :  { %s464_s19 = scalar_lea.vmem %s343_s7, 16  ;;  %s468_s20 = scalar_lea.vmem %s343_s7, 128 }
 0x2d7   :  { %p465_p2 = scmp.ne.s32.totalorder %s343_s7, %s464_s19  ;;  %p469_p3 = scmp.lt.s32.totalorder %s343_s7, %s343_s7 }
 0x2d8   :  { %p470_p4 = scmp.lt.s32.totalorder %s468_s20, %s464_s19 }
 0x2da   :  { %p471_p5 = por %p470_p4, %p469_p3 }
 0x2dc   :  { %p472_p6 = pnand %p471_p5, %p465_p2 }
 0x2de   :  { %475 = shalt.err (!%p472_p6)
}
 0x2df   :  { %s476_s23 = scalar_lea.hbm %s617_s8, 16 }
 0x2e0   :  { %p477_p7 = scmp.ne.s32.totalorder %s617_s8, %s476_s23  ;;  %p480_p8 = scmp.lt.u32.totalorder %s476_s23, %s617_s8 }
 0x2e2   :  { %p482_p9 = pnand %p480_p8, %p477_p7 }
 0x2e4   :  { %485 = shalt.err (!%p482_p9)
}
 0x2e5   :  { %s500_s29 = smov 16   ;;  %s501_s2 = smov 1  }
 0x2e6   :  { %348 = dma.vmem_to_hbm [thread:$0]  %s343_s7, 16, %s617_s8, [#allocation5], %s500_s29, %s500_s29, %s501_s2  }
 0x2e7   :  { %490 = dma.done.wait [#allocation5], 128  }
 0x2e8   :  { %491 = vsyncadd [#allocation5], 4294967168 }
 0x2e9   :  { %352 = vsyncpa [#allocation4], 1 }
 0x2ea   :  { %353 = vsyncpa [#allocation7], 1 }
 0x2eb   :  { %354 = vsyncpa [#allocation5], 1 }

</bundles_post_ra>
